<compile_context>
chip_gen: v7x
topology: tpu7x:2x2x1
jax: 0.10.0
libtpu: 0.0.40
codegen_flags: <defaults>
</compile_context>

<pallas_src>
import functools

import jax
import jax.numpy as jnp
from jax.experimental import pallas as pl
from jax.experimental.pallas import tpu as pltpu

LANE = 128     # TPU lane width
SUBLANE = 8    # TPU sublane count (f32)


def _round_up(n, m):
    return ((n + m - 1) // m) * m


def _pick_block_rows(batch, cap=2048, min_rows=128, min_tiles=4):
    """Adaptive batch tile: as large as possible (amortize per-step overhead and MXU weight
    re-pushes), capped at 2048 rows (keeps v5e's 16 MiB scoped VMEM safe), while keeping
    >= min_tiles tiles when the batch allows so v7x's two TensorCores each get >= 2 tiles."""
    batch_p = _round_up(max(batch, 1), min_rows)
    target = max(min_rows, batch_p // min_tiles)
    target = (target // min_rows) * min_rows
    return max(min_rows, min(cap, target, batch_p))


def mlp_kernel(x_ref, w1_ref, b1_ref, w2_ref, b2_ref, w3t_ref, b3t_ref, ot_ref):
    # x arrives as f32 straight from HBM; cast to bf16 in-kernel (VPU, hidden under the MXU).
    x = x_ref[...].astype(w1_ref.dtype)
    # Layer 0: Linear + ReLU (bf16 MXU operands, f32 accumulate, f32 bias/ReLU on the VPU).
    h1 = jnp.dot(x, w1_ref[...], preferred_element_type=jnp.float32)
    h1 = jnp.maximum(h1 + b1_ref[...], 0.0)
    # Layer 2: Linear + ReLU.
    h2 = jnp.dot(h1.astype(w2_ref.dtype), w2_ref[...], preferred_element_type=jnp.float32)
    h2 = jnp.maximum(h2 + b2_ref[...], 0.0)
    # Layer 4: Linear, computed transposed: out.T = W3.T @ h2.T.  The (out_p=16, block_rows)
    # result keeps the big batch axis on lanes (lane-dense stores) at ~1/8 the write bytes of
    # a 128-wide padded output; the h2 transpose rides the otherwise-idle XLU slot.
    h2t = h2.T.astype(w3t_ref.dtype)                      # (hid_p, block_rows)
    out_t = jnp.dot(w3t_ref[...], h2t, preferred_element_type=jnp.float32)
    ot_ref[...] = out_t + b3t_ref[...]                    # (out_p, block_rows), f32


def prepare_params(w1, b1, w2, b2, w3, b3, compute_dtype=jnp.bfloat16):
    """Pad feature dims, transpose the last-layer weight, and cast matmul weights to bf16.

    Hoisted out of the per-call path so repeated forward passes reuse the prepared params.
    Padded entries are exactly zero, so padded rows/columns contribute nothing.
    Weights are stored as [in, out] (== PyTorch weight.T); w3 is additionally transposed to
    [out_p, hid_p] so the final layer can be computed in the transposed (narrow) layout.
    """
    in_dim, hid = w1.shape
    out_dim = w3.shape[1]
    in_p = _round_up(in_dim, LANE)
    hid_p = _round_up(hid, LANE)
    out_p = _round_up(out_dim, SUBLANE * 2)   # 16 sublanes: keeps bf16/f32 tiles aligned

    def pad2(a, rows, cols):
        return jnp.pad(a, ((0, rows - a.shape[0]), (0, cols - a.shape[1])))

    w1p = pad2(w1, in_p, hid_p).astype(compute_dtype)
    w2p = pad2(w2, hid_p, hid_p).astype(compute_dtype)
    w3t = pad2(w3.T, out_p, hid_p).astype(compute_dtype)              # (out_p, hid_p)
    # Biases stay f32: bias-add / ReLU run in f32 on the VPU (no bf16 VPU path on v5e).
    b1p = pad2(b1.reshape(1, -1).astype(jnp.float32), 1, hid_p)       # (1, hid_p)
    b2p = pad2(b2.reshape(1, -1).astype(jnp.float32), 1, hid_p)       # (1, hid_p)
    b3t = pad2(b3.reshape(-1, 1).astype(jnp.float32), out_p, 1)       # (out_p, 1)
    return (w1p, b1p, w2p, b2p, w3t, b3t)


@functools.partial(jax.jit, static_argnames=("out_dim",))
def simple_test_model(x, padded_params, *, out_dim):
    w1p, b1p, w2p, b2p, w3t, b3t = padded_params
    batch, in_dim = x.shape
    in_p, hid_p = w1p.shape
    out_p = w3t.shape[0]

    block_rows = _pick_block_rows(batch)
    batch_p = _round_up(max(batch, 1), block_rows)

    # x stays f32 (kernel casts to bf16 on the VPU) -> no extra HBM conversion pass over x.
    xp = x.astype(jnp.float32)
    if batch_p != batch or in_p != in_dim:
        xp = jnp.pad(xp, ((0, batch_p - batch), (0, in_p - in_dim)))

    grid = (batch_p // block_rows,)
    # Constant index_map -> weights/biases stay VMEM-resident across batch-tile grid steps.
    resident = lambda a: pl.BlockSpec(a.shape, lambda i: (0, 0))

    flops = 2 * batch_p * (in_p * hid_p + hid_p * hid_p + hid_p * out_p)
    param_bytes = sum(int(a.size) * a.dtype.itemsize for a in padded_params)
    bytes_accessed = int(batch_p * in_p * 4 + param_bytes + out_p * batch_p * 4)

    out_t = pl.pallas_call(
        mlp_kernel,
        out_shape=jax.ShapeDtypeStruct((out_p, batch_p), jnp.float32),
        grid=grid,
        in_specs=[
            pl.BlockSpec((block_rows, in_p), lambda i: (i, 0)),   # batch tile of x (f32)
            resident(w1p), resident(b1p),
            resident(w2p), resident(b2p),
            resident(w3t), resident(b3t),
        ],
        # Transposed, narrow output: out_p sublanes x block_rows lanes -> lane-dense stores.
        out_specs=pl.BlockSpec((out_p, block_rows), lambda i: (0, i)),
        compiler_params=pltpu.CompilerParams(
            dimension_semantics=("parallel",),        # batch tiles split across TCs on v7x
            vmem_limit_bytes=32 * 1024 * 1024,        # v5e default scoped VMEM is only 16 MiB
        ),
        cost_estimate=pl.CostEstimate(
            flops=flops, transcendentals=0, bytes_accessed=bytes_accessed),
    )(xp, w1p, b1p, w2p, b2p, w3t, b3t)

    # Tiny post-op: (out_p, batch_p) -> (batch, out_dim).
    return out_t[:out_dim, :batch].T


def reference_mlp_f32(x, w1, b1, w2, b2, w3, b3):
    h1 = jnp.maximum(x @ w1 + b1, 0.0)
    h2 = jnp.maximum(h1 @ w2 + b2, 0.0)
    return h2 @ w3 + b3


def reference_mlp_bf16(x, w1, b1, w2, b2, w3, b3):
    # Same numerics as the kernel: bf16 matmul operands, f32 accumulation, f32 bias/ReLU.
    cd = jnp.bfloat16
    h1 = jnp.dot(x.astype(cd), w1.astype(cd), preferred_element_type=jnp.float32) + b1
    h1 = jnp.maximum(h1, 0.0)
    h2 = jnp.dot(h1.astype(cd), w2.astype(cd), preferred_element_type=jnp.float32) + b2
    h2 = jnp.maximum(h2, 0.0)
    return jnp.dot(h2.astype(cd), w3.astype(cd), preferred_element_type=jnp.float32) + b3


if __name__ == "__main__":
    # Module spec dims (input_dim=128, hidden_dim=64, output_dim=10).
    input_dim, hidden_dim, output_dim = 128, 64, 10

    key = jax.random.PRNGKey(0)
    kx, k1, k2, k3, kb1, kb2, kb3 = jax.random.split(key, 7)

    # Deterministic synthetic params; weights stored as [in, out] (== PyTorch W.T).
    w1 = jax.random.normal(k1, (input_dim, hidden_dim), jnp.float32) * (1.0 / input_dim ** 0.5)
    b1 = jax.random.normal(kb1, (hidden_dim,), jnp.float32) * 0.01
    w2 = jax.random.normal(k2, (hidden_dim, hidden_dim), jnp.float32) * (1.0 / hidden_dim ** 0.5)
    b2 = jax.random.normal(kb2, (hidden_dim,), jnp.float32) * 0.01
    w3 = jax.random.normal(k3, (hidden_dim, output_dim), jnp.float32) * (1.0 / hidden_dim ** 0.5)
    b3 = jax.random.normal(kb3, (output_dim,), jnp.float32) * 0.01

    params = prepare_params(w1, b1, w2, b2, w3, b3)  # pad + transpose + bf16-cast once

    # Small batch (exercises batch padding) and a multi-tile batch (exercises the grid).
    for batch in (8, 512):
        x = jax.random.normal(jax.random.fold_in(kx, batch), (batch, input_dim), jnp.float32)
        out = jax.block_until_ready(simple_test_model(x, params, out_dim=output_dim))
        assert out.shape == (batch, output_dim), out.shape

        # Tight check vs a reference with identical bf16-operand / f32-accumulate numerics.
        ref_bf16 = reference_mlp_bf16(x, w1, b1, w2, b2, w3, b3)
        assert jnp.allclose(out, ref_bf16, atol=2e-3, rtol=2e-3), "mismatch vs bf16 reference"

        # Loose check vs the pure-f32 forward (bf16 operand rounding tolerance).
        ref_f32 = reference_mlp_f32(x, w1, b1, w2, b2, w3, b3)
        assert jnp.allclose(out, ref_f32, atol=5e-2, rtol=5e-2), "mismatch vs f32 reference"

    print("KERNEL_OK")
</pallas_src>

<mosaic_0001>
module attributes {stable_mosaic.version = 11 : i64} {
  func.func @mlp_kernel(%arg0: i32, %arg1: memref<128x128xf32, #tpu.memory_space<vmem>>, %arg2: memref<128x128xbf16, #tpu.memory_space<vmem>>, %arg3: memref<1x128xf32, #tpu.memory_space<vmem>>, %arg4: memref<128x128xbf16, #tpu.memory_space<vmem>>, %arg5: memref<1x128xf32, #tpu.memory_space<vmem>>, %arg6: memref<16x128xbf16, #tpu.memory_space<vmem>>, %arg7: memref<16x1xf32, #tpu.memory_space<vmem>>, %arg8: memref<16x128xf32, #tpu.memory_space<vmem>>) attributes {dimension_semantics = [#tpu.dimension_semantics<parallel>], iteration_bounds = array<i64: 1>, scalar_prefetch = 0 : i64, scratch_operands = 0 : i64, tpu.core_type = #tpu.core_type<tc>, window_params = [{transform_indices = @transform_0, window_bounds = array<i64: 128, 128>}, {pipeline_mode = #tpu.pipeline_mode<synchronous>, transform_indices = @transform_1, window_bounds = array<i64: 128, 128>}, {pipeline_mode = #tpu.pipeline_mode<synchronous>, transform_indices = @transform_2, window_bounds = array<i64: 1, 128>}, {pipeline_mode = #tpu.pipeline_mode<synchronous>, transform_indices = @transform_3, window_bounds = array<i64: 128, 128>}, {pipeline_mode = #tpu.pipeline_mode<synchronous>, transform_indices = @transform_4, window_bounds = array<i64: 1, 128>}, {pipeline_mode = #tpu.pipeline_mode<synchronous>, transform_indices = @transform_5, window_bounds = array<i64: 16, 128>}, {pipeline_mode = #tpu.pipeline_mode<synchronous>, transform_indices = @transform_6, window_bounds = array<i64: 16, 1>}, {transform_indices = @transform_7, window_bounds = array<i64: 16, 128>}]} {
    %c0 = arith.constant 0 : index
    %c0_0 = arith.constant 0 : index
    %0 = vector.load %arg1[%c0, %c0_0] : memref<128x128xf32, #tpu.memory_space<vmem>>, vector<128x128xf32>
    %1 = arith.truncf %0 : vector<128x128xf32> to vector<128x128xbf16>
    %c0_1 = arith.constant 0 : index
    %c0_2 = arith.constant 0 : index
    %2 = vector.load %arg2[%c0_1, %c0_2] : memref<128x128xbf16, #tpu.memory_space<vmem>>, vector<128x128xbf16>
    %cst = arith.constant dense<0.000000e+00> : vector<128x128xf32>
    %3 = tpu.matmul %1, %2, %cst {dimension_numbers = #tpu.dot_dimension_numbers<[1], [0], [0], [1], [0, 0, 1, 1], [], []>} : vector<128x128xbf16>, vector<128x128xbf16>, vector<128x128xf32> -> vector<128x128xf32>
    %c0_3 = arith.constant 0 : index
    %c0_4 = arith.constant 0 : index
    %4 = vector.load %arg3[%c0_3, %c0_4] : memref<1x128xf32, #tpu.memory_space<vmem>>, vector<1x128xf32>
    %5 = vector.broadcast %4 : vector<1x128xf32> to vector<128x128xf32>
    %6 = arith.addf %3, %5 : vector<128x128xf32>
    %cst_5 = arith.constant 0.000000e+00 : f32
    %7 = vector.broadcast %cst_5 : f32 to vector<128x128xf32>
    %8 = arith.maximumf %6, %7 : vector<128x128xf32>
    %9 = arith.truncf %8 : vector<128x128xf32> to vector<128x128xbf16>
    %c0_6 = arith.constant 0 : index
    %c0_7 = arith.constant 0 : index
    %10 = vector.load %arg4[%c0_6, %c0_7] : memref<128x128xbf16, #tpu.memory_space<vmem>>, vector<128x128xbf16>
    %cst_8 = arith.constant dense<0.000000e+00> : vector<128x128xf32>
    %11 = tpu.matmul %9, %10, %cst_8 {dimension_numbers = #tpu.dot_dimension_numbers<[1], [0], [0], [1], [0, 0, 1, 1], [], []>} : vector<128x128xbf16>, vector<128x128xbf16>, vector<128x128xf32> -> vector<128x128xf32>
    %c0_9 = arith.constant 0 : index
    %c0_10 = arith.constant 0 : index
    %12 = vector.load %arg5[%c0_9, %c0_10] : memref<1x128xf32, #tpu.memory_space<vmem>>, vector<1x128xf32>
    %13 = vector.broadcast %12 : vector<1x128xf32> to vector<128x128xf32>
    %14 = arith.addf %11, %13 : vector<128x128xf32>
    %cst_11 = arith.constant 0.000000e+00 : f32
    %15 = vector.broadcast %cst_11 : f32 to vector<128x128xf32>
    %16 = arith.maximumf %14, %15 : vector<128x128xf32>
    %17 = tpu.transpose %16, [1, 0] : vector<128x128xf32> -> vector<128x128xf32>
    %18 = arith.truncf %17 : vector<128x128xf32> to vector<128x128xbf16>
    %c0_12 = arith.constant 0 : index
    %c0_13 = arith.constant 0 : index
    %19 = vector.load %arg6[%c0_12, %c0_13] : memref<16x128xbf16, #tpu.memory_space<vmem>>, vector<16x128xbf16>
    %cst_14 = arith.constant dense<0.000000e+00> : vector<16x128xf32>
    %20 = tpu.matmul %19, %18, %cst_14 {dimension_numbers = #tpu.dot_dimension_numbers<[1], [0], [0], [1], [0, 0, 1, 1], [], []>} : vector<16x128xbf16>, vector<128x128xbf16>, vector<16x128xf32> -> vector<16x128xf32>
    %c0_15 = arith.constant 0 : index
    %c0_16 = arith.constant 0 : index
    %21 = vector.load %arg7[%c0_15, %c0_16] : memref<16x1xf32, #tpu.memory_space<vmem>>, vector<16x1xf32>
    %22 = vector.broadcast %21 : vector<16x1xf32> to vector<16x128xf32>
    %23 = arith.addf %20, %22 : vector<16x128xf32>
    %c0_17 = arith.constant 0 : index
    %c0_18 = arith.constant 0 : index
    %24 = vector.load %arg8[%c0_17, %c0_18] : memref<16x128xf32, #tpu.memory_space<vmem>>, vector<16x128xf32>
    tpu.vector_store %arg8[%c0_17, %c0_18], %23 {strides = array<i32>} : memref<16x128xf32, #tpu.memory_space<vmem>>, vector<16x128xf32>,
    return
  }
  func.func @transform_0(%arg0: i32) -> (i32, i32) {
    %c0_i32 = arith.constant 0 : i32
    %c0_i32_0 = arith.constant 0 : i32
    return %arg0, %c0_i32 : i32, i32
  }
  func.func @transform_1(%arg0: i32) -> (i32, i32) {
    %c0_i32 = arith.constant 0 : i32
    %c0_i32_0 = arith.constant 0 : i32
    %c0_i32_1 = arith.constant 0 : i32
    return %c0_i32, %c0_i32_0 : i32, i32
  }
  func.func @transform_2(%arg0: i32) -> (i32, i32) {
    %c0_i32 = arith.constant 0 : i32
    %c0_i32_0 = arith.constant 0 : i32
    %c0_i32_1 = arith.constant 0 : i32
    return %c0_i32, %c0_i32_0 : i32, i32
  }
  func.func @transform_3(%arg0: i32) -> (i32, i32) {
    %c0_i32 = arith.constant 0 : i32
    %c0_i32_0 = arith.constant 0 : i32
    %c0_i32_1 = arith.constant 0 : i32
    return %c0_i32, %c0_i32_0 : i32, i32
  }
  func.func @transform_4(%arg0: i32) -> (i32, i32) {
    %c0_i32 = arith.constant 0 : i32
    %c0_i32_0 = arith.constant 0 : i32
    %c0_i32_1 = arith.constant 0 : i32
    return %c0_i32, %c0_i32_0 : i32, i32
  }
  func.func @transform_5(%arg0: i32) -> (i32, i32) {
    %c0_i32 = arith.constant 0 : i32
    %c0_i32_0 = arith.constant 0 : i32
    %c0_i32_1 = arith.constant 0 : i32
    return %c0_i32, %c0_i32_0 : i32, i32
  }
  func.func @transform_6(%arg0: i32) -> (i32, i32) {
    %c0_i32 = arith.constant 0 : i32
    %c0_i32_0 = arith.constant 0 : i32
    %c0_i32_1 = arith.constant 0 : i32
    return %c0_i32, %c0_i32_0 : i32, i32
  }
  func.func @transform_7(%arg0: i32) -> (i32, i32) {
    %c0_i32 = arith.constant 0 : i32
    %c0_i32_0 = arith.constant 0 : i32
    return %c0_i32, %arg0 : i32, i32
  }
}

</mosaic_0001>

<bundles_post_ra>
// kernel: simple_test_model.1
= control target key start
LH: loop header
LB: loop body
LE: loop exit
PB: predicated region body
PF: predicated region fallthrough
CT: control target
= control target key end

     0   :  { %vm701_vm0 = vmmov 0   ;;  %s887_s1 = inlined_call_operand.vmem [shape: bf16[128,128], index: 1, kind: input, shape index: {}]   ;;  %s888_s0 = inlined_call_operand.vmem [shape: f32[128,128], index: 0, kind: input, shape index: {}]   ;;  %s889_s3 = inlined_call_operand.vmem [shape: bf16[128,128], index: 3, kind: input, shape index: {}]   ;;  %s890_s2 = inlined_call_operand.vmem [shape: f32[1,128], index: 2, kind: input, shape index: {}]   ;;  %s891_s4 = inlined_call_operand.vmem [shape: f32[1,128], index: 4, kind: input, shape index: {}]   ;;  %s892_s5 = inlined_call_operand.vmem [shape: bf16[16,128], index: 5, kind: input, shape index: {}]   ;;  %s893_s6 = inlined_call_operand.vmem [shape: f32[16,1], index: 6, kind: input, shape index: {}]   ;;  %s894_s7 = inlined_call_operand.vmem [shape: f32[16,128], index: 7, kind: output, shape index: {}]  }
   0x1   :  { %v683_v0 = vld [vmem:[%s887_s1] sm:$0xff]   ;;  %v684_v1 = vld [vmem:[%s887_s1 + $0x8] sm:$0xff]   ;;  %v685_v2 = vld [vmem:[%s887_s1 + $0x10] sm:$0xff]  }
   0x2   :  { %594 = vmatprep.subr.bf16.mxu0 %v683_v0  ;;  %v686_v3 = vld [vmem:[%s887_s1 + $0x18] sm:$0xff]   ;;  %v27_v4 = vld [vmem:[%s888_s0] sm:$0xff]  ;;  %v28_v5 = vld [vmem:[%s888_s0 + $0x8] sm:$0xff] }
   0x3   :  { %595 = vmatpush3.bf16.msra.mxu0 %v683_v0  ;;  %v43_v6 = vpack.c.bf16 %v28_v5, %v27_v4  ;;  %v687_v7 = vld [vmem:[%s887_s1 + $0x20] sm:$0xff]   ;;  %v692_v9 = vld [vmem:[%s889_s3 + $0x8] sm:$0xff]   ;;  %v693_v11 = vld [vmem:[%s889_s3 + $0x10] sm:$0xff]  }
   0x4   :  { %596 = vmatprep.subr.bf16.mxu0 %v684_v1  ;;  %v691_v8 = vld [vmem:[%s889_s3] sm:$0xff]   ;;  %v688_v10 = vld [vmem:[%s887_s1 + $0x28] sm:$0xff]   ;;  %v689_v12 = vld [vmem:[%s887_s1 + $0x30] sm:$0xff]  }
   0x5   :  { %610 = vmatprep.mubr.bf16.mxu0 %v43_v6  ;;  %626 = vmatprep.subr.bf16.mxu1 %v691_v8  ;;  %v694_v13 = vld [vmem:[%s889_s3 + $0x18] sm:$0xff]   ;;  %v695_v15 = vld [vmem:[%s889_s3 + $0x20] sm:$0xff]   ;;  %v29_v16 = vld [vmem:[%s888_s0 + $0x10] sm:$0xff] }
   0x6   :  { %627 = vmatpush3.bf16.msra.mxu1 %v691_v8  ;;  %v690_v14 = vld [vmem:[%s887_s1 + $0x38] sm:$0xff]   ;;  %v31_v18 = vld [vmem:[%s888_s0 + $0x20] sm:$0xff]  ;;  %v32_v19 = vld [vmem:[%s888_s0 + $0x28] sm:$0xff] }
   0x7   :  { %597 = vmatpush3.bf16.msra.mxu0 %v684_v1  ;;  %628 = vmatprep.subr.bf16.mxu1 %v692_v9  ;;  %v30_v17 = vld [vmem:[%s888_s0 + $0x18] sm:$0xff]  ;;  %v696_v21 = vld [vmem:[%s889_s3 + $0x28] sm:$0xff]   ;;  %v45_v22 = vpack.c.bf16 %v32_v19, %v31_v18  ;;  %v33_v23 = vld [vmem:[%s888_s0 + $0x30] sm:$0xff] }
   0x8   :  { %598 = vmatprep.subr.bf16.mxu0 %v685_v2  ;;  %v44_v20 = vpack.c.bf16 %v30_v17, %v29_v16  ;;  %v34_v24 = vld [vmem:[%s888_s0 + $0x38] sm:$0xff]  ;;  %v35_v25 = vld [vmem:[%s888_s0 + $0x40] sm:$0xff]  ;;  %v36_v26 = vld [vmem:[%s888_s0 + $0x48] sm:$0xff] }
   0x9   :  { %v46_v27 = vpack.c.bf16 %v34_v24, %v33_v23  ;;  %v47_v28 = vpack.c.bf16 %v36_v26, %v35_v25  ;;  %v37_v29 = vld [vmem:[%s888_s0 + $0x50] sm:$0xff]  ;;  %v38_v30 = vld [vmem:[%s888_s0 + $0x58] sm:$0xff]  ;;  %v39_v31 = vld [vmem:[%s888_s0 + $0x60] sm:$0xff] }
   0xa   :  { %629 = vmatpush3.bf16.msra.mxu1 %v692_v9  ;;  %v40_v32 = vld [vmem:[%s888_s0 + $0x68] sm:$0xff]  ;;  %v48_v33 = vpack.c.bf16 %v38_v30, %v37_v29  ;;  %v41_v35 = vld [vmem:[%s888_s0 + $0x70] sm:$0xff]  ;;  %v42_v36 = vld [vmem:[%s888_s0 + $0x78] sm:$0xff] }
   0xb   :  { %599 = vmatpush3.bf16.msra.mxu0 %v685_v2  ;;  %630 = vmatprep.subr.bf16.mxu1 %v693_v11  ;;  %v49_v34 = vpack.c.bf16 %v40_v32, %v39_v31  ;;  %v50_v37 = vpack.c.bf16 %v42_v36, %v41_v35  ;;  %v697_v38 = vld [vmem:[%s889_s3 + $0x30] sm:$0xff]   ;;  %v698_v39 = vld [vmem:[%s889_s3 + $0x38] sm:$0xff]   ;;  %v534_v40 = vld [vmem:[%s890_s2] ss:$0 sm:$0xff] }
   0xc   :  { %600 = vmatprep.subr.bf16.mxu0 %v686_v3 }
   0xe   :  { %631 = vmatpush3.bf16.msra.mxu1 %v693_v11 }
   0xf   :  { %601 = vmatpush3.bf16.msra.mxu0 %v686_v3  ;;  %632 = vmatprep.subr.bf16.mxu1 %v694_v13 }
  0x10   :  { %602 = vmatprep.subr.bf16.mxu0 %v687_v7 }
  0x12   :  { %633 = vmatpush3.bf16.msra.mxu1 %v694_v13 }
  0x13   :  { %603 = vmatpush3.bf16.msra.mxu0 %v687_v7  ;;  %634 = vmatprep.subr.bf16.mxu1 %v695_v15 }
  0x14   :  { %604 = vmatprep.subr.bf16.mxu0 %v688_v10 }
  0x16   :  { %635 = vmatpush3.bf16.msra.mxu1 %v695_v15 }
  0x17   :  { %605 = vmatpush3.bf16.msra.mxu0 %v688_v10  ;;  %636 = vmatprep.subr.bf16.mxu1 %v696_v21 }
  0x18   :  { %606 = vmatprep.subr.bf16.mxu0 %v689_v12 }
  0x1a   :  { %637 = vmatpush3.bf16.msra.mxu1 %v696_v21 }
  0x1b   :  { %607 = vmatpush3.bf16.msra.mxu0 %v689_v12  ;;  %638 = vmatprep.subr.bf16.mxu1 %v697_v38 }
  0x1c   :  { %608 = vmatprep.subr.bf16.mxu0 %v690_v14 }
  0x1e   :  { %639 = vmatpush3.bf16.msra.mxu1 %v697_v38 }
  0x1f   :  { %609 = vmatpush3.bf16.msra.mxu0 %v690_v14  ;;  %640 = vmatprep.subr.bf16.mxu1 %v698_v39 }
  0x22   :  { %611 = vmatmul.mubr.bf16.vlgmr.msra.gmra.mrb[0].mxu0 %v44_v20  ;;  %641 = vmatpush3.bf16.msra.mxu1 %v698_v39 }
  0x23   :  { %614 = vmatprep.mubr.bf16.mxu0 %v45_v22 }
  0x2a   :  { %615 = vmatmul.mubr.bf16.gmra.mrb[4].mxu0 %v46_v27 }
  0x2b   :  { %618 = vmatprep.mubr.bf16.mxu0 %v47_v28 }
  0x32   :  { %619 = vmatmul.mubr.bf16.gmra.mrb[8].mxu0 %v48_v33  ;;  %v845_v33 = vld [vmem:[%s891_s4] ss:$0 sm:$0xff] }
  0x33   :  { %622 = vmatprep.mubr.bf16.mxu0 %v49_v34 }
  0x3a   :  { %623 = vmatmul.mubr.bf16.gmra.mrb[12].mxu0 %v50_v37 }
  0xf5   :  { %v612_v41 = vpop.f32.mrb[0].mxu0 }
  0xf6   :  { %v165_v42 = vadd.f32 %v612_v41, %v534_v40  ;;  %v156_v43 = vpop.f32.mrb[1].mxu0 }
  0xf7   :  { %v157_v44 = vadd.f32 %v534_v40, %v156_v43  ;;  %v613_v45 = vpop.f32.mrb[2].mxu0 }
  0xf8   :  { %v168_v46 = vadd.f32 %v613_v45, %v534_v40  ;;  %v159_v47 = vpop.f32.mrb[3].mxu0  ;;  %v221_v49 = vmax.f32 %v165_v42, 0.0 }
  0xf9   :  { %v160_v48 = vadd.f32 %v534_v40, %v159_v47  ;;  %v219_v51 = vmax.f32 %v157_v44, 0.0 }
  0xfa   :  { %v222_v50 = vmax.f32 %v168_v46, 0.0 }
  0xfb   :  { %v220_v52 = vmax.f32 %v160_v48, 0.0 }
  0xfc   :  { %v236_v53 = vpack.c.bf16 %v222_v50, %v221_v49  ;;  %v700_v49 = vmov 0.0  }
  0xfd   :  { %v616_v54 = vpop.f32.mrb[4].mxu0  ;;  %v235_v55 = vpack.c.bf16 %v220_v52, %v219_v51  ;;  %658 = vmatprep.subr.bf16.mxu0 %v700_v49  ;;  %674 = vmatprep.mubr.msk.bf16.mxu0 %vm701_vm0, %v700_v49 }
  0xfe   :  { %v181_v56 = vadd.f32 %v616_v54, %v534_v40  ;;  %v172_v57 = vpop.f32.mrb[5].mxu0 }
  0xff   :  { %v173_v58 = vadd.f32 %v534_v40, %v172_v57  ;;  %642 = vmatprep.mubr.bf16.mxu1 %v235_v55  ;;  %v617_v59 = vpop.f32.mrb[6].mxu0 }
 0x100   :  { %v225_v60 = vmax.f32 %v181_v56, 0.0  ;;  %v184_v61 = vadd.f32 %v617_v59, %v534_v40  ;;  %643 = vmatmul.mubr.bf16.vlgmr.msra.gmra.mrb[0].mxu1 %v236_v53  ;;  %v175_v62 = vpop.f32.mrb[7].mxu0 }
 0x101   :  { %v223_v63 = vmax.f32 %v173_v58, 0.0  ;;  %v176_v0 = vadd.f32 %v534_v40, %v175_v62 }
 0x102   :  { %v226_v1 = vmax.f32 %v184_v61, 0.0 }
 0x103   :  { %v224_v2 = vmax.f32 %v176_v0, 0.0 }
 0x104   :  { %v238_v3 = vpack.c.bf16 %v226_v1, %v225_v60 }
 0x105   :  { %v237_v4 = vpack.c.bf16 %v224_v2, %v223_v63  ;;  %v620_v5 = vpop.f32.mrb[8].mxu0 }
 0x106   :  { %v197_v6 = vadd.f32 %v620_v5, %v534_v40  ;;  %v188_v7 = vpop.f32.mrb[9].mxu0 }
 0x107   :  { %646 = vmatprep.mubr.bf16.mxu1 %v237_v4  ;;  %v189_v8 = vadd.f32 %v534_v40, %v188_v7  ;;  %v621_v9 = vpop.f32.mrb[10].mxu0 }
 0x108   :  { %647 = vmatmul.mubr.bf16.gmra.mrb[4].mxu1 %v238_v3  ;;  %v229_v10 = vmax.f32 %v197_v6, 0.0  ;;  %v200_v11 = vadd.f32 %v621_v9, %v534_v40  ;;  %v191_v12 = vpop.f32.mrb[11].mxu0 }
 0x109   :  { %v227_v13 = vmax.f32 %v189_v8, 0.0  ;;  %v192_v14 = vadd.f32 %v534_v40, %v191_v12 }
 0x10a   :  { %v230_v15 = vmax.f32 %v200_v11, 0.0 }
 0x10b   :  { %v228_v16 = vmax.f32 %v192_v14, 0.0 }
 0x10c   :  { %v240_v17 = vpack.c.bf16 %v230_v15, %v229_v10 }
 0x10d   :  { %v239_v18 = vpack.c.bf16 %v228_v16, %v227_v13  ;;  %v624_v19 = vpop.f32.mrb[12].mxu0 }
 0x10e   :  { %v213_v20 = vadd.f32 %v624_v19, %v534_v40  ;;  %v204_v21 = vpop.f32.mrb[13].mxu0  ;;  %v702_v19 = vmov 0  }
 0x10f   :  { %650 = vmatprep.mubr.bf16.mxu1 %v239_v18  ;;  %v205_v22 = vadd.f32 %v534_v40, %v204_v21  ;;  %v625_v23 = vpop.f32.mrb[14].mxu0  ;;  %681 = vset.pattern.permute.xlu1 %v702_v19  ;;  %v470_v21 = vld [vmem:[%s893_s6 + $0x8] sm:$0xff] }
 0x110   :  { %651 = vmatmul.mubr.bf16.gmra.mrb[8].mxu1 %v240_v17  ;;  %v233_v24 = vmax.f32 %v213_v20, 0.0  ;;  %v216_v25 = vadd.f32 %v625_v23, %v534_v40  ;;  %v207_v26 = vpop.f32.mrb[15].mxu0  ;;  %v469_v20 = vld [vmem:[%s893_s6] sm:$0xff] }
 0x111   :  { %v231_v27 = vmax.f32 %v205_v22, 0.0  ;;  %v208_v28 = vadd.f32 %v534_v40, %v207_v26  ;;  %473 = vperm.xlu1 %681, %v469_v20  }
 0x112   :  { %v234_v29 = vmax.f32 %v216_v25, 0.0 }
 0x113   :  { %v232_v30 = vmax.f32 %v208_v28, 0.0 }
 0x114   :  { %v242_v31 = vpack.c.bf16 %v234_v29, %v233_v24 }
 0x115   :  { %v241_v32 = vpack.c.bf16 %v232_v30, %v231_v27  ;;  %478 = vperm.xlu1 %681, %v470_v21  }
 0x117   :  { %654 = vmatprep.mubr.bf16.mxu1 %v241_v32 }
 0x118   :  { %655 = vmatmul.mubr.bf16.gmra.mrb[12].mxu1 %v242_v31 }
 0x1d3   :  { %v644_v34 = vpop.f32.mrb[0].mxu1 }
 0x1d4   :  { %v348_v35 = vpop.f32.mrb[1].mxu1  ;;  %v357_v41 = vadd.f32 %v644_v34, %v845_v33 }
 0x1d5   :  { %v645_v36 = vpop.f32.mrb[2].mxu1  ;;  %v349_v37 = vadd.f32 %v845_v33, %v348_v35 }
 0x1d6   :  { %v351_v38 = vpop.f32.mrb[3].mxu1  ;;  %v413_v47 = vmax.f32 %v357_v41, 0.0  ;;  %v360_v48 = vadd.f32 %v645_v36, %v845_v33 }
 0x1d7   :  { %v352_v39 = vadd.f32 %v845_v33, %v351_v38  ;;  %v411_v40 = vmax.f32 %v349_v37, 0.0 }
 0x1d8   :  { %v414_v50 = vmax.f32 %v360_v48, 0.0 }
 0x1d9   :  { %427 = vxpose.xlu0.b32.start [1/16] %v411_v40, 128  ;;  %v412_v42 = vmax.f32 %v352_v39, 0.0 }
 0x1db   :  { %v648_v43 = vpop.f32.mrb[4].mxu1 }
 0x1dc   :  { %v364_v44 = vpop.f32.mrb[5].mxu1  ;;  %v373_v58 = vadd.f32 %v648_v43, %v845_v33 }
 0x1dd   :  { %428 = vxpose.xlu0.b32.cont [2/16] %v412_v42, 128  ;;  %v649_v45 = vpop.f32.mrb[6].mxu1  ;;  %v365_v51 = vadd.f32 %v845_v33, %v364_v44 }
 0x1de   :  { %v367_v46 = vpop.f32.mrb[7].mxu1  ;;  %v417_v0 = vmax.f32 %v373_v58, 0.0  ;;  %v376_v1 = vadd.f32 %v649_v45, %v845_v33 }
 0x1df   :  { %v415_v56 = vmax.f32 %v365_v51, 0.0  ;;  %v368_v57 = vadd.f32 %v845_v33, %v367_v46  ;;  %v699_v46 = vld [vmem:[%s892_s5] sm:$0xff]  }
 0x1e0   :  { %v418_v2 = vmax.f32 %v376_v1, 0.0 }
 0x1e1   :  { %429 = vxpose.xlu0.b32.cont [3/16] %v413_v47, 128  ;;  %v416_v59 = vmax.f32 %v368_v57, 0.0  ;;  %v474_v47 = vpop.permute.xlu1 %473 }
 0x1e3   :  { %v652_v52 = vpop.f32.mrb[8].mxu1 }
 0x1e4   :  { %v380_v53 = vpop.f32.mrb[9].mxu1  ;;  %v389_v6 = vadd.f32 %v652_v52, %v845_v33 }
 0x1e5   :  { %430 = vxpose.xlu0.b32.cont [4/16] %v414_v50, 128  ;;  %v653_v54 = vpop.f32.mrb[10].mxu1  ;;  %v381_v3 = vadd.f32 %v845_v33, %v380_v53  ;;  %v479_v52 = vpop.permute.xlu1 %478 }
 0x1e6   :  { %v383_v55 = vpop.f32.mrb[11].mxu1  ;;  %v421_v8 = vmax.f32 %v389_v6, 0.0  ;;  %v392_v9 = vadd.f32 %v653_v54, %v845_v33 }
 0x1e7   :  { %v419_v4 = vmax.f32 %v381_v3, 0.0  ;;  %v384_v5 = vadd.f32 %v845_v33, %v383_v55 }
 0x1e8   :  { %v422_v10 = vmax.f32 %v392_v9, 0.0 }
 0x1e9   :  { %431 = vxpose.xlu0.b32.cont [5/16] %v415_v56, 128  ;;  %v420_v7 = vmax.f32 %v384_v5, 0.0 }
 0x1eb   :  { %v656_v60 = vpop.f32.mrb[12].mxu1 }
 0x1ec   :  { %v396_v61 = vpop.f32.mrb[13].mxu1  ;;  %v405_v14 = vadd.f32 %v656_v60, %v845_v33 }
 0x1ed   :  { %432 = vxpose.xlu0.b32.cont [6/16] %v416_v59, 128  ;;  %v657_v62 = vpop.f32.mrb[14].mxu1  ;;  %v397_v11 = vadd.f32 %v845_v33, %v396_v61 }
 0x1ee   :  { %v399_v63 = vpop.f32.mrb[15].mxu1  ;;  %v425_v16 = vmax.f32 %v405_v14, 0.0  ;;  %v408_v17 = vadd.f32 %v657_v62, %v845_v33 }
 0x1ef   :  { %v423_v12 = vmax.f32 %v397_v11, 0.0  ;;  %v400_v13 = vadd.f32 %v845_v33, %v399_v63 }
 0x1f0   :  { %v426_v18 = vmax.f32 %v408_v17, 0.0 }
 0x1f1   :  { %433 = vxpose.xlu0.b32.cont [7/16] %v417_v0, 128  ;;  %v424_v15 = vmax.f32 %v400_v13, 0.0 }
 0x1f5   :  { %434 = vxpose.xlu0.b32.cont [8/16] %v418_v2, 128 }
 0x1f9   :  { %435 = vxpose.xlu0.b32.cont [9/16] %v419_v4, 128 }
 0x1fd   :  { %436 = vxpose.xlu0.b32.cont [10/16] %v420_v7, 128 }
 0x201   :  { %437 = vxpose.xlu0.b32.cont [11/16] %v421_v8, 128 }
 0x205   :  { %438 = vxpose.xlu0.b32.cont [12/16] %v422_v10, 128 }
 0x209   :  { %439 = vxpose.xlu0.b32.cont [13/16] %v423_v12, 128 }
 0x20d   :  { %440 = vxpose.xlu0.b32.cont [14/16] %v424_v15, 128 }
 0x211   :  { %441 = vxpose.xlu0.b32.cont [15/16] %v425_v16, 128 }
 0x215   :  { %442 = vxpose.xlu0.b32.end [16/16] %v426_v18, 128 }
 0x23e   :  { %682 = vset.pattern.permute.xlu0 %v702_v19 }
 0x259   :  { %v443_v22 = vpop.trf.xlu0 }
 0x25d   :  { %v444_v23 = vpop.trf.xlu0 }
 0x25e   :  { %v459_v24 = vpack.c.bf16 %v444_v23, %v443_v22 }
 0x260   :  { %659 = vmatpush3.bf16.msra.mxu0 %v459_v24 }
 0x261   :  { %v445_v25 = vpop.trf.xlu0  ;;  %660 = vmatprep.subr.bf16.mxu0 %v700_v49 }
 0x265   :  { %v446_v26 = vpop.trf.xlu0 }
 0x266   :  { %v460_v27 = vpack.c.bf16 %v446_v26, %v445_v25 }
 0x268   :  { %661 = vmatpush3.bf16.msra.mxu0 %v460_v27 }
 0x269   :  { %v447_v28 = vpop.trf.xlu0  ;;  %662 = vmatprep.subr.bf16.mxu0 %v700_v49 }
 0x26d   :  { %v448_v29 = vpop.trf.xlu0 }
 0x26e   :  { %v461_v30 = vpack.c.bf16 %v448_v29, %v447_v28 }
 0x270   :  { %663 = vmatpush3.bf16.msra.mxu0 %v461_v30 }
 0x271   :  { %v449_v31 = vpop.trf.xlu0  ;;  %664 = vmatprep.subr.bf16.mxu0 %v700_v49 }
 0x275   :  { %v450_v32 = vpop.trf.xlu0 }
 0x276   :  { %v462_v33 = vpack.c.bf16 %v450_v32, %v449_v31 }
 0x278   :  { %665 = vmatpush3.bf16.msra.mxu0 %v462_v33 }
 0x279   :  { %v451_v34 = vpop.trf.xlu0  ;;  %666 = vmatprep.subr.bf16.mxu0 %v700_v49 }
 0x27d   :  { %v452_v35 = vpop.trf.xlu0 }
 0x27e   :  { %v463_v36 = vpack.c.bf16 %v452_v35, %v451_v34 }
 0x280   :  { %667 = vmatpush3.bf16.msra.mxu0 %v463_v36 }
 0x281   :  { %v453_v37 = vpop.trf.xlu0  ;;  %668 = vmatprep.subr.bf16.mxu0 %v700_v49 }
 0x285   :  { %v454_v38 = vpop.trf.xlu0 }
 0x286   :  { %v464_v39 = vpack.c.bf16 %v454_v38, %v453_v37 }
 0x288   :  { %669 = vmatpush3.bf16.msra.mxu0 %v464_v39 }
 0x289   :  { %v455_v40 = vpop.trf.xlu0  ;;  %670 = vmatprep.subr.bf16.mxu0 %v700_v49 }
 0x28d   :  { %v456_v41 = vpop.trf.xlu0 }
 0x28e   :  { %v465_v42 = vpack.c.bf16 %v456_v41, %v455_v40 }
 0x290   :  { %671 = vmatpush3.bf16.msra.mxu0 %v465_v42 }
 0x291   :  { %v457_v43 = vpop.trf.xlu0  ;;  %672 = vmatprep.subr.bf16.mxu0 %v700_v49 }
 0x295   :  { %v458_v44 = vpop.trf.xlu0 }
 0x296   :  { %v466_v45 = vpack.c.bf16 %v458_v44, %v457_v43 }
 0x298   :  { %673 = vmatpush3.bf16.msra.mxu0 %v466_v45 }
 0x29b   :  { %675 = vmatmul.mubr.bf16.vlgmr.msra.gmra.mrb[16].mxu0 %v699_v46 }
 0x36e   :  { %v521_v48 = vpop.f32.mrb[16].mxu0 }
 0x36f   :  { %v522_v50 = vadd.f32 %v521_v48, %v474_v47  ;;  %v676_v51 = vpop.f32.mrb[17].mxu0 }
 0x370   :  { %v524_v53 = vpop.f32.mrb[18].mxu0 }
 0x371   :  { %528 = vst [vmem:[%s894_s7] sm:$0xff] %v522_v50  ;;  %v525_v54 = vadd.f32 %v524_v53, %v479_v52  ;;  %v677_v49 = vpop.f32.mrb[19].mxu0 }
 0x373   :  { %529 = vst [vmem:[%s894_s7 + $0x8] sm:$0xff] %v525_v54 }

</bundles_post_ra>
